<compile_context>
chip_gen: v5e
topology: v5e:2x2
jax: 0.10.0
libtpu: 0.0.40
codegen_flags: <defaults>
</compile_context>

<pallas_src>
import jax
import jax.numpy as jnp
from jax import lax
from jax.experimental import pallas as pl
from jax.experimental.pallas import tpu as pltpu

LATENT = 128
OUT_ROWS = 8          # sublane-aligned output rows: row 0 = head1, row 1 = head2
EPS = 1e-5


# --------------------------------------------------------------------------- #
# Kernel
# --------------------------------------------------------------------------- #
def _heads_kernel(mol_ref, w_eff_ref, b_eff_ref, w2t_ref, b2_ref, out_ref):
    x = mol_ref[...]                                         # [TB, 128] f32

    # Shared LayerNorm statistics (affine already folded into W_eff / b_eff).
    mu = jnp.mean(x, axis=-1, keepdims=True)
    var = jnp.mean(x * x, axis=-1, keepdims=True) - mu * mu
    x_hat = (x - mu) * lax.rsqrt(var + EPS)                  # [TB, 128]

    # Fused {LN-affine, Linear(128,128), eval-BatchNorm} for BOTH heads on the
    # MXU (bf16 operands, f32 accumulation): [TB,128] @ [128,256] + [1,256]
    h = jnp.dot(x_hat.astype(jnp.bfloat16), w_eff_ref[...],
                preferred_element_type=jnp.float32)
    h = jnp.maximum(h + b_eff_ref[...], 0.0)                 # Dropout(eval)=id, ReLU

    # Both heads' Linear(128,1), computed directly in transposed (lane-dense)
    # form: (8,256) . (TB,256)^T -> (8, TB).  Same contraction pattern as the
    # attention Q.K^T einsum; rows >= 2 of w2t are zero padding.
    o = lax.dot_general(w2t_ref[...], h.astype(jnp.bfloat16),
                        (((1,), (1,)), ((), ())),
                        preferred_element_type=jnp.float32)  # [8, TB]
    o = o + b2_ref[...]

    # Epilogue on dense vregs:
    #   row 0: sigmoid * 100            (out1)
    #   row 1: sigmoid * 200 - 100      (== (sigmoid - 0.5) * 200, out2)
    s = jax.nn.sigmoid(o)
    row = lax.broadcasted_iota(jnp.int32, (OUT_ROWS, 1), 0).astype(jnp.float32)
    out_ref[...] = s * (100.0 * (row + 1.0)) + (-100.0 * row)


# --------------------------------------------------------------------------- #
# Wrapper
# --------------------------------------------------------------------------- #
def _round_up(x, m):
    return ((x + m - 1) // m) * m


@jax.jit
def metabognn_heads(mol, params):
    """mol: [B, 128] f32 -> (out1 [B], out2 [B])."""
    B, D = mol.shape
    assert D == LATENT
    w_eff, b_eff, w2t, b2 = params

    # Lane-aligned batch tile (multiple of 128) so the transposed (8, TB) output
    # block is lane-dense; aim for >= 2 grid steps (v7x: both TensorCores get
    # work); cap the tile at 2048 rows.  No jnp.pad: Pallas masks the ragged
    # last block, and its garbage never reaches the returned slices.
    TB = min(2048, max(LATENT, _round_up((B + 1) // 2, LATENT)))
    grid = (pl.cdiv(B, TB),)

    out = pl.pallas_call(
        _heads_kernel,
        out_shape=jax.ShapeDtypeStruct((OUT_ROWS, B), jnp.float32),
        grid=grid,
        in_specs=[
            pl.BlockSpec((TB, LATENT), lambda i: (i, 0)),            # mol tile
            pl.BlockSpec((LATENT, 2 * LATENT), lambda i: (0, 0)),    # fused W1 (resident)
            pl.BlockSpec((1, 2 * LATENT), lambda i: (0, 0)),         # fused bias
            pl.BlockSpec((OUT_ROWS, 2 * LATENT), lambda i: (0, 0)),  # block-diag W2^T
            pl.BlockSpec((OUT_ROWS, 1), lambda i: (0, 0)),           # [b2a, b2b, 0, ...]
        ],
        out_specs=pl.BlockSpec((OUT_ROWS, TB), lambda i: (0, i)),
        compiler_params=pltpu.CompilerParams(
            dimension_semantics=("parallel",)),      # batch axis over v7x's 2 TCs
    )(mol, w_eff, b_eff, w2t, b2)

    return out[0, :], out[1, :]


# --------------------------------------------------------------------------- #
# Parameter construction / constant folding
# --------------------------------------------------------------------------- #
def init_raw_head(key):
    """Per-head parameters in PyTorch-equivalent values.

    NOTE: W1 is stored [in, out] here; a PyTorch nn.Linear checkpoint stores
    [out, in] and must be transposed on load before folding.
    """
    k1, k2, k3, k4 = jax.random.split(key, 4)
    bound = 1.0 / (LATENT ** 0.5)
    return dict(
        ln_w=jnp.ones((LATENT,), jnp.float32),     # LayerNorm weight
        ln_b=jnp.zeros((LATENT,), jnp.float32),    # LayerNorm bias
        w1=jax.random.uniform(k1, (LATENT, LATENT), jnp.float32, -bound, bound),
        b1=jax.random.uniform(k2, (LATENT,), jnp.float32, -bound, bound),
        bn_g=jnp.ones((LATENT,), jnp.float32),     # BatchNorm gamma
        bn_b=jnp.zeros((LATENT,), jnp.float32),    # BatchNorm beta
        bn_m=jnp.zeros((LATENT,), jnp.float32),    # running mean
        bn_v=jnp.ones((LATENT,), jnp.float32),     # running var
        w2=0.01 * jax.random.normal(k3, (LATENT,), jnp.float32),  # Linear(128,1), std=0.01
        b2=jax.random.uniform(k4, (), jnp.float32, -bound, bound),
    )


def _fold_head(p):
    """Fold LN affine + eval-mode BN into an effective [128,128] weight + [128] bias."""
    s = p["bn_g"] * lax.rsqrt(p["bn_v"] + EPS)          # BN scale
    t = p["bn_b"] - p["bn_m"] * s                       # BN shift
    w_eff = (p["ln_w"][:, None] * p["w1"]) * s[None, :]
    b_eff = (p["ln_b"] @ p["w1"] + p["b1"]) * s + t
    return w_eff, b_eff


def fold_params(head_a, head_b):
    """Pack both heads into the fused operands consumed by the kernel."""
    wa, ba = _fold_head(head_a)
    wb, bb = _fold_head(head_b)
    w_eff = jnp.concatenate([wa, wb], axis=1).astype(jnp.bfloat16)  # [128, 256] bf16
    b_eff = jnp.concatenate([ba, bb])[None, :]                      # [1, 256]  f32
    # Block-diagonal final weights, stored TRANSPOSED and padded to 8 rows:
    # row 0 holds head-1's Linear(128,1) weights in cols 0:128, row 1 holds
    # head-2's in cols 128:256; rows 2..7 are zero (sublane padding).
    w2t = jnp.zeros((OUT_ROWS, 2 * LATENT), jnp.float32)
    w2t = w2t.at[0, :LATENT].set(head_a["w2"]).at[1, LATENT:].set(head_b["w2"])
    w2t = w2t.astype(jnp.bfloat16)                                  # [8, 256] bf16
    b2 = jnp.zeros((OUT_ROWS, 1), jnp.float32)
    b2 = b2.at[0, 0].set(head_a["b2"]).at[1, 0].set(head_b["b2"])   # [8, 1]   f32
    return w_eff, b_eff, w2t, b2


# --------------------------------------------------------------------------- #
# Pure-JAX reference (unfused, f32), mirrors the PyTorch module in eval mode
# --------------------------------------------------------------------------- #
def reference_heads(mol, head_a, head_b):
    def head(p):
        mu = jnp.mean(mol, axis=-1, keepdims=True)
        var = jnp.mean((mol - mu) ** 2, axis=-1, keepdims=True)
        xn = (mol - mu) / jnp.sqrt(var + EPS) * p["ln_w"] + p["ln_b"]
        h = xn @ p["w1"] + p["b1"]
        h = (h - p["bn_m"]) / jnp.sqrt(p["bn_v"] + EPS) * p["bn_g"] + p["bn_b"]
        h = jnp.maximum(h, 0.0)
        return h @ p["w2"] + p["b2"]

    o1 = head(head_a)
    o2 = head(head_b)
    return jax.nn.sigmoid(o1) * 100.0, (jax.nn.sigmoid(o2) - 0.5) * 200.0


# --------------------------------------------------------------------------- #
if __name__ == "__main__":
    key = jax.random.PRNGKey(0)
    k_mol, k_a, k_b = jax.random.split(key, 3)

    B = 8  # small batch of molecule embeddings (stand-in for the GNN output)
    mol = jax.random.normal(k_mol, (B, LATENT), jnp.float32)

    head_a = init_raw_head(k_a)
    head_b = init_raw_head(k_b)
    params = fold_params(head_a, head_b)

    out1, out2 = metabognn_heads(mol, params)
    jax.block_until_ready((out1, out2))

    # Correctness vs the unfused pure-f32 reference of the PyTorch heads.
    # Tolerance is relaxed because the kernel uses bf16 MXU operands (with f32
    # accumulation) and the outputs are scaled by 100/200 after the sigmoid.
    ref1, ref2 = reference_heads(mol, head_a, head_b)
    assert out1.shape == (B,) and out2.shape == (B,)
    assert bool(jnp.all(jnp.isfinite(out1))) and bool(jnp.all(jnp.isfinite(out2)))
    assert bool(jnp.allclose(out1, ref1, rtol=1e-4, atol=1e-1))
    assert bool(jnp.allclose(out2, ref2, rtol=1e-4, atol=1e-1))
    # Range sanity: out1 in (0,100), out2 in (-100,100) by construction.
    assert bool(jnp.all((out1 > 0.0) & (out1 < 100.0)))
    assert bool(jnp.all((out2 > -100.0) & (out2 < 100.0)))

    print("KERNEL_OK")
</pallas_src>

<mosaic_0001>
module attributes {stable_mosaic.version = 11 : i64} {
  func.func @_heads_kernel(%arg0: i32, %arg1: memref<128x128xf32, #tpu.memory_space<vmem>>, %arg2: memref<128x256xbf16, #tpu.memory_space<vmem>>, %arg3: memref<1x256xf32, #tpu.memory_space<vmem>>, %arg4: memref<8x256xbf16, #tpu.memory_space<vmem>>, %arg5: memref<8x1xf32, #tpu.memory_space<vmem>>, %arg6: memref<8x128xf32, #tpu.memory_space<vmem>>) attributes {dimension_semantics = [#tpu.dimension_semantics<parallel>], iteration_bounds = array<i64: 1>, scalar_prefetch = 0 : i64, scratch_operands = 0 : i64, tpu.core_type = #tpu.core_type<tc>, window_params = [{transform_indices = @transform_0, window_bounds = array<i64: 128, 128>}, {pipeline_mode = #tpu.pipeline_mode<synchronous>, transform_indices = @transform_1, window_bounds = array<i64: 128, 256>}, {pipeline_mode = #tpu.pipeline_mode<synchronous>, transform_indices = @transform_2, window_bounds = array<i64: 1, 256>}, {pipeline_mode = #tpu.pipeline_mode<synchronous>, transform_indices = @transform_3, window_bounds = array<i64: 8, 256>}, {pipeline_mode = #tpu.pipeline_mode<synchronous>, transform_indices = @transform_4, window_bounds = array<i64: 8, 1>}, {transform_indices = @transform_5, window_bounds = array<i64: 8, 128>}]} {
    %c0 = arith.constant 0 : index
    %c0_0 = arith.constant 0 : index
    %0 = vector.load %arg1[%c0, %c0_0] : memref<128x128xf32, #tpu.memory_space<vmem>>, vector<128x128xf32>
    %cst = arith.constant dense<0.000000e+00> : vector<128xf32>
    %1 = vector.multi_reduction <add>, %0, %cst [1] : vector<128x128xf32> to vector<128xf32>
    %2 = vector.shape_cast %1 : vector<128xf32> to vector<128x1xf32>
    %cst_1 = arith.constant 1.280000e+02 : f32
    %3 = vector.broadcast %cst_1 : f32 to vector<128x1xf32>
    %4 = arith.divf %2, %3 : vector<128x1xf32>
    %5 = arith.mulf %0, %0 : vector<128x128xf32>
    %cst_2 = arith.constant dense<0.000000e+00> : vector<128xf32>
    %6 = vector.multi_reduction <add>, %5, %cst_2 [1] : vector<128x128xf32> to vector<128xf32>
    %7 = vector.shape_cast %6 : vector<128xf32> to vector<128x1xf32>
    %cst_3 = arith.constant 1.280000e+02 : f32
    %8 = vector.broadcast %cst_3 : f32 to vector<128x1xf32>
    %9 = arith.divf %7, %8 : vector<128x1xf32>
    %10 = arith.mulf %4, %4 : vector<128x1xf32>
    %11 = arith.subf %9, %10 : vector<128x1xf32>
    %12 = vector.broadcast %4 : vector<128x1xf32> to vector<128x128xf32>
    %13 = arith.subf %0, %12 : vector<128x128xf32>
    %cst_4 = arith.constant 9.99999974E-6 : f32
    %14 = vector.broadcast %cst_4 : f32 to vector<128x1xf32>
    %15 = arith.addf %11, %14 : vector<128x1xf32>
    %16 = math.rsqrt %15 : vector<128x1xf32>
    %17 = vector.broadcast %16 : vector<128x1xf32> to vector<128x128xf32>
    %18 = arith.mulf %13, %17 : vector<128x128xf32>
    %19 = arith.truncf %18 : vector<128x128xf32> to vector<128x128xbf16>
    %c0_5 = arith.constant 0 : index
    %c0_6 = arith.constant 0 : index
    %20 = vector.load %arg2[%c0_5, %c0_6] : memref<128x256xbf16, #tpu.memory_space<vmem>>, vector<128x256xbf16>
    %cst_7 = arith.constant dense<0.000000e+00> : vector<128x256xf32>
    %21 = tpu.matmul %19, %20, %cst_7 {dimension_numbers = #tpu.dot_dimension_numbers<[1], [0], [0], [1], [0, 0, 1, 1], [], []>} : vector<128x128xbf16>, vector<128x256xbf16>, vector<128x256xf32> -> vector<128x256xf32>
    %c0_8 = arith.constant 0 : index
    %c0_9 = arith.constant 0 : index
    %22 = vector.load %arg3[%c0_8, %c0_9] : memref<1x256xf32, #tpu.memory_space<vmem>>, vector<1x256xf32>
    %23 = vector.broadcast %22 : vector<1x256xf32> to vector<128x256xf32>
    %24 = arith.addf %21, %23 : vector<128x256xf32>
    %cst_10 = arith.constant 0.000000e+00 : f32
    %25 = vector.broadcast %cst_10 : f32 to vector<128x256xf32>
    %26 = arith.maximumf %24, %25 : vector<128x256xf32>
    %c0_11 = arith.constant 0 : index
    %c0_12 = arith.constant 0 : index
    %27 = vector.load %arg4[%c0_11, %c0_12] : memref<8x256xbf16, #tpu.memory_space<vmem>>, vector<8x256xbf16>
    %28 = arith.truncf %26 : vector<128x256xf32> to vector<128x256xbf16>
    %cst_13 = arith.constant dense<0.000000e+00> : vector<8x128xf32>
    %29 = tpu.matmul %27, %28, %cst_13 {dimension_numbers = #tpu.dot_dimension_numbers<[1], [1], [0], [0], [0, 0, 1, 0], [], []>} : vector<8x256xbf16>, vector<128x256xbf16>, vector<8x128xf32> -> vector<8x128xf32>
    %c0_14 = arith.constant 0 : index
    %c0_15 = arith.constant 0 : index
    %30 = vector.load %arg5[%c0_14, %c0_15] : memref<8x1xf32, #tpu.memory_space<vmem>>, vector<8x1xf32>
    %31 = vector.broadcast %30 : vector<8x1xf32> to vector<8x128xf32>
    %32 = arith.addf %29, %31 : vector<8x128xf32>
    %33 = arith.negf %32 : vector<8x128xf32>
    %34 = math.exp %33 : vector<8x128xf32>
    %cst_16 = arith.constant 1.000000e+00 : f32
    %35 = vector.broadcast %cst_16 : f32 to vector<8x128xf32>
    %36 = arith.addf %35, %34 : vector<8x128xf32>
    %37 = arith.divf %35, %36 : vector<8x128xf32>
    %38 = tpu.iota {dimensions = array<i32: 0>} : vector<8x1xi32>
    %39 = arith.sitofp %38 : vector<8x1xi32> to vector<8x1xf32>
    %cst_17 = arith.constant 1.000000e+00 : f32
    %40 = vector.broadcast %cst_17 : f32 to vector<8x1xf32>
    %41 = arith.addf %39, %40 : vector<8x1xf32>
    %cst_18 = arith.constant 1.000000e+02 : f32
    %42 = vector.broadcast %cst_18 : f32 to vector<8x1xf32>
    %43 = arith.mulf %42, %41 : vector<8x1xf32>
    %44 = vector.broadcast %43 : vector<8x1xf32> to vector<8x128xf32>
    %45 = arith.mulf %37, %44 : vector<8x128xf32>
    %cst_19 = arith.constant -1.000000e+02 : f32
    %46 = vector.broadcast %cst_19 : f32 to vector<8x1xf32>
    %47 = arith.mulf %46, %39 : vector<8x1xf32>
    %48 = vector.broadcast %47 : vector<8x1xf32> to vector<8x128xf32>
    %49 = arith.addf %45, %48 : vector<8x128xf32>
    %c0_20 = arith.constant 0 : index
    %c0_21 = arith.constant 0 : index
    %50 = vector.load %arg6[%c0_20, %c0_21] : memref<8x128xf32, #tpu.memory_space<vmem>>, vector<8x128xf32>
    tpu.vector_store %arg6[%c0_20, %c0_21], %49 {strides = array<i32>} : memref<8x128xf32, #tpu.memory_space<vmem>>, vector<8x128xf32>,
    return
  }
  func.func @transform_0(%arg0: i32) -> (i32, i32) {
    %c0_i32 = arith.constant 0 : i32
    %c0_i32_0 = arith.constant 0 : i32
    return %arg0, %c0_i32 : i32, i32
  }
  func.func @transform_1(%arg0: i32) -> (i32, i32) {
    %c0_i32 = arith.constant 0 : i32
    %c0_i32_0 = arith.constant 0 : i32
    %c0_i32_1 = arith.constant 0 : i32
    return %c0_i32, %c0_i32_0 : i32, i32
  }
  func.func @transform_2(%arg0: i32) -> (i32, i32) {
    %c0_i32 = arith.constant 0 : i32
    %c0_i32_0 = arith.constant 0 : i32
    %c0_i32_1 = arith.constant 0 : i32
    return %c0_i32, %c0_i32_0 : i32, i32
  }
  func.func @transform_3(%arg0: i32) -> (i32, i32) {
    %c0_i32 = arith.constant 0 : i32
    %c0_i32_0 = arith.constant 0 : i32
    %c0_i32_1 = arith.constant 0 : i32
    return %c0_i32, %c0_i32_0 : i32, i32
  }
  func.func @transform_4(%arg0: i32) -> (i32, i32) {
    %c0_i32 = arith.constant 0 : i32
    %c0_i32_0 = arith.constant 0 : i32
    %c0_i32_1 = arith.constant 0 : i32
    return %c0_i32, %c0_i32_0 : i32, i32
  }
  func.func @transform_5(%arg0: i32) -> (i32, i32) {
    %c0_i32 = arith.constant 0 : i32
    %c0_i32_0 = arith.constant 0 : i32
    return %c0_i32, %arg0 : i32, i32
  }
}

</mosaic_0001>

<bundles_post_ra>
// kernel: metabognn_heads.1
= control target key start
LH: loop header
LB: loop body
LE: loop exit
PB: predicated region body
PF: predicated region fallthrough
CT: control target
= control target key end

     0   :  { %10 = vsyncpa [#allocation3], 0  ;;  %s1515_s0 = inlined_call_operand.vmem [shape: f32[8,128], index: 0, kind: input, shape index: {}]   ;;  %s1516_s1 = inlined_call_operand.hbm [shape: bf16[128,256], index: 1, kind: input, shape index: {}]   ;;  %s1517_s2 = inlined_call_operand.hbm [shape: f32[1,256], index: 2, kind: input, shape index: {}]   ;;  %s1518_s3 = inlined_call_operand.hbm [shape: bf16[8,256], index: 3, kind: input, shape index: {}]   ;;  %s1519_s4 = inlined_call_operand.vmem [shape: f32[8,1], index: 4, kind: input, shape index: {}]   ;;  %s1520_s5 = inlined_call_operand.vmem [shape: f32[8,8], index: 5, kind: output, shape index: {}]  }
   0x1   :  { %11 = vsyncpa [#allocation5], 0  ;;  %s32_s20 = sshll.u32 %s1517_s2, 4  ;;  %s972_s21 = smov [#allocation4]   ;;  %s33_s20 = int_to_ptr.hbm [resolvable:$true] %s32_s20 }
   0x2   :  { %s34_s22 = sshll.u32 %s972_s21, 4  ;;  %s18_s25 = sshll.u32 %s1516_s1, 4  ;;  %s35_s22 = int_to_ptr.vmem [resolvable:$true] %s34_s22  ;;  %s19_s25 = int_to_ptr.hbm [resolvable:$true] %s18_s25 }
   0x3   :  { %37 = dma.hbm_to_vmem [thread:$0]  %s33_s20, 32, %s35_s22, [#allocation5]  }
   0x4   :  { %s973_s26 = smov [#allocation2]   ;;  %s974_s28 = smov 128  }
   0x5   :  { %s20_s27 = sshll.u32 %s973_s26, 4  ;;  %s975_s29 = smov 8   ;;  %s21_s27 = int_to_ptr.vmem [resolvable:$true] %s20_s27 }
   0x6   :  { %26 = dma.hbm_to_vmem [thread:$0]  %s19_s25, 2048, %s21_s27, [#allocation3], %s974_s28, %s974_s28, %s975_s29  }
   0x7   :  { %s43_s2 = sshll.u32 %s1518_s3, 4  ;;  %s976_s7 = smov [#allocation6]   ;;  %s44_s2 = int_to_ptr.hbm [resolvable:$true] %s43_s2 }
   0x8   :  { %s45_s8 = sshll.u32 %s976_s7, 4  ;;  %s46_s8 = int_to_ptr.vmem [resolvable:$true] %s45_s8 }
   0x9   :  { %48 = dma.hbm_to_vmem [thread:$0]  %s44_s2, 128, %s46_s8, [#allocation5]  }
   0xa   :  { %968 = dma.done.wait [#allocation3], 2048  }
   0xb   :  { %969 = vsyncadd [#allocation3], 4294965248 }
   0xc   :  { %970 = dma.done.wait [#allocation5], 160  }
   0xd   :  { %971 = vsyncadd [#allocation5], 4294967136  ;;  %v1021_v0 = vld [vmem:[%s1515_s0] sm:$0xff]  ;;  %v1026_v1 = vld [vmem:[%s1515_s0 + $0x10] sm:$0xff]  ;;  %v977_v32 = vmov 128.0  }
   0xe   :  { %79 = vadd.xlane.f32.xlu0 %v1021_v0  ;;  %83 = vadd.xlane.f32.xlu2 %v1026_v1  ;;  %v134_v2 = vmul.f32 %v1021_v0, %v1021_v0  ;;  %v1035_v3 = vld [vmem:[%s1515_s0 + $0x8] sm:$0xff]  ;;  %v1040_v4 = vld [vmem:[%s1515_s0 + $0x18] sm:$0xff]  ;;  %v136_v6 = vmul.f32 %v1026_v1, %v1026_v1  ;;  %v1051_v7 = vld [vmem:[%s1515_s0 + $0x20] sm:$0xff]  ;;  %858 = vrcp.f32 %v977_v32 }
   0xf   :  { %v135_v5 = vmul.f32 %v1035_v3, %v1035_v3  ;;  %v137_v8 = vmul.f32 %v1040_v4, %v1040_v4  ;;  %v1059_v9 = vld [vmem:[%s1515_s0 + $0x28] sm:$0xff]  ;;  %v138_v11 = vmul.f32 %v1051_v7, %v1051_v7  ;;  %v1069_v12 = vld [vmem:[%s1515_s0 + $0x30] sm:$0xff]  ;;  %v1076_v14 = vld [vmem:[%s1515_s0 + $0x38] sm:$0xff] }
  0x10   :  { %150 = vadd.xlane.f32.xlu1 %v134_v2  ;;  %v139_v10 = vmul.f32 %v1059_v9, %v1059_v9  ;;  %v140_v13 = vmul.f32 %v1069_v12, %v1069_v12  ;;  %v141_v15 = vmul.f32 %v1076_v14, %v1076_v14  ;;  %v1085_v16 = vld [vmem:[%s1515_s0 + $0x48] sm:$0xff]  ;;  %v1090_v17 = vld [vmem:[%s1515_s0 + $0x40] sm:$0xff]  ;;  %v1099_v19 = vld [vmem:[%s1515_s0 + $0x50] sm:$0xff] }
  0x11   :  { %v142_v18 = vmul.f32 %v1090_v17, %v1090_v17  ;;  %v143_v20 = vmul.f32 %v1085_v16, %v1085_v16  ;;  %v1107_v21 = vld [vmem:[%s1515_s0 + $0x58] sm:$0xff]  ;;  %v144_v23 = vmul.f32 %v1099_v19, %v1099_v19  ;;  %v1117_v24 = vld [vmem:[%s1515_s0 + $0x60] sm:$0xff]  ;;  %v1124_v26 = vld [vmem:[%s1515_s0 + $0x68] sm:$0xff] }
  0x12   :  { %v145_v22 = vmul.f32 %v1107_v21, %v1107_v21  ;;  %v146_v25 = vmul.f32 %v1117_v24, %v1117_v24  ;;  %v147_v27 = vmul.f32 %v1124_v26, %v1124_v26  ;;  %v1133_v28 = vld [vmem:[%s1515_s0 + $0x78] sm:$0xff]  ;;  %v1138_v29 = vld [vmem:[%s1515_s0 + $0x70] sm:$0xff]  ;;  %v818_v40 = vld [vmem:[#allocation2 + $0x60] sm:$0xf] }
  0x13   :  { %v148_v30 = vmul.f32 %v1138_v29, %v1138_v29  ;;  %v149_v31 = vmul.f32 %v1133_v28, %v1133_v28  ;;  %v826_v33 = vld [vmem:[#allocation2 + $0x70] sm:$0xf]  ;;  %v848_v34 = vld [vmem:[#allocation2 + $0x74] sm:$0xf0]  ;;  %v847_v35 = vld [vmem:[#allocation2 + $0x74] sm:$0xf] }
  0x14   :  { %v827_v36 = vor.u32 %v848_v34, %v826_v33  ;;  %v828_v37 = vld [vmem:[#allocation2 + $0x78] sm:$0xf0]  ;;  %v859_v39 = vpop.eup %858  ;;  %v846_v41 = vld [vmem:[#allocation2 + $0x64] sm:$0xf0]  ;;  %v845_v42 = vld [vmem:[#allocation2 + $0x64] sm:$0xf] }
  0x15   :  { %v831_v38 = vor.u32 %v847_v35, %v828_v37  ;;  %v819_v43 = vor.u32 %v846_v41, %v818_v40  ;;  %v820_v44 = vld [vmem:[#allocation2 + $0x68] sm:$0xf0]  ;;  %v112_v46 = vmul.f32 128.0, %v859_v39  ;;  %v810_v47 = vld [vmem:[#allocation2 + $0x50] sm:$0xf]  ;;  %vm116_vm0 = vweird.f32 %v859_v39 }
  0x16   :  { %81 = vadd.xlane.f32.xlu0 %v1035_v3  ;;  %85 = vadd.xlane.f32.xlu2 %v1040_v4  ;;  %v823_v45 = vor.u32 %v845_v42, %v820_v44  ;;  %v844_v48 = vld [vmem:[#allocation2 + $0x54] sm:$0xf0]  ;;  %v843_v49 = vld [vmem:[#allocation2 + $0x54] sm:$0xf]  ;;  %v812_v51 = vld [vmem:[#allocation2 + $0x58] sm:$0xf0] }
  0x17   :  { %548 = vmatpush.bf16.msra.mxu0 %v827_v36  ;;  %597 = vmatpush.bf16.msra.mxu1 %v831_v38  ;;  %v811_v50 = vor.u32 %v844_v48, %v810_v47  ;;  %v815_v52 = vor.u32 %v843_v49, %v812_v51  ;;  %v113_v53 = vsub.f32 1.0, %v112_v46  ;;  %v802_v54 = vld [vmem:[#allocation2 + $0x40] sm:$0xf]  ;;  %v842_v55 = vld [vmem:[#allocation2 + $0x44] sm:$0xf0] }
  0x18   :  { %152 = vadd.xlane.f32.xlu1 %v135_v5  ;;  %v841_v56 = vld [vmem:[#allocation2 + $0x44] sm:$0xf]  ;;  %v803_v57 = vor.u32 %v842_v55, %v802_v54  ;;  %v804_v58 = vld [vmem:[#allocation2 + $0x48] sm:$0xf0]  ;;  %v794_v61 = vld [vmem:[#allocation2 + $0x30] sm:$0xf] }
  0x19   :  { %v807_v59 = vor.u32 %v841_v56, %v804_v58  ;;  %v114_v60 = vmul.f32 %v859_v39, %v113_v53  ;;  %v840_v62 = vld [vmem:[#allocation2 + $0x34] sm:$0xf0]  ;;  %v839_v63 = vld [vmem:[#allocation2 + $0x34] sm:$0xf]  ;;  %v796_v5 = vld [vmem:[#allocation2 + $0x38] sm:$0xf0] }
  0x1a   :  { %v795_v2 = vor.u32 %v840_v62, %v794_v61  ;;  %v770_v37 = vld [vmem:[#allocation2] sm:$0xf]  ;;  %v834_v38 = vld [vmem:[#allocation2 + $0x4] sm:$0xf0]  ;;  %v833_v40 = vld [vmem:[#allocation2 + $0x4] sm:$0xf] }
  0x1b   :  { %549 = vmatpush.bf16.msra.mxu0 %v819_v43  ;;  %598 = vmatpush.bf16.msra.mxu1 %v823_v45  ;;  %v772_v41 = vld [vmem:[#allocation2 + $0x8] sm:$0xf0]  ;;  %v771_v43 = vor.u32 %v834_v38, %v770_v37 }
  0x1c   :  { %v775_v44 = vor.u32 %v833_v40, %v772_v41 }
  0x1e   :  { %154 = vadd.xlane.f32.xlu0 %v136_v6  ;;  %87 = vadd.xlane.f32.xlu2 %v1051_v7  ;;  %v799_v6 = vor.u32 %v839_v63, %v796_v5 }
  0x1f   :  { %550 = vmatpush.bf16.msra.mxu0 %v811_v50  ;;  %599 = vmatpush.bf16.msra.mxu1 %v815_v52 }
  0x20   :  { %156 = vadd.xlane.f32.xlu1 %v137_v8  ;;  %v115_v8 = vadd.f32 %v859_v39, %v114_v60 }
  0x23   :  { %551 = vmatpush.bf16.msra.mxu0 %v803_v57  ;;  %600 = vmatpush.bf16.msra.mxu1 %v807_v59 }
  0x26   :  { %89 = vadd.xlane.f32.xlu0 %v1059_v9  ;;  %160 = vadd.xlane.f32.xlu2 %v139_v10  ;;  %v786_v10 = vld [vmem:[#allocation2 + $0x20] sm:$0xf] }
  0x27   :  { %552 = vmatpush.bf16.msra.mxu0 %v795_v2  ;;  %601 = vmatpush.bf16.msra.mxu1 %v799_v6 }
  0x28   :  { %158 = vadd.xlane.f32.xlu1 %v138_v11  ;;  %v838_v11 = vld [vmem:[#allocation2 + $0x24] sm:$0xf0] }
  0x2e   :  { %91 = vadd.xlane.f32.xlu0 %v1069_v12  ;;  %162 = vadd.xlane.f32.xlu2 %v140_v13  ;;  %v837_v13 = vld [vmem:[#allocation2 + $0x24] sm:$0xf] }
  0x30   :  { %93 = vadd.xlane.f32.xlu1 %v1076_v14 }
  0x36   :  { %164 = vadd.xlane.f32.xlu0 %v141_v15  ;;  %97 = vadd.xlane.f32.xlu2 %v1085_v16  ;;  %v787_v15 = vor.u32 %v838_v11, %v786_v10 }
  0x38   :  { %95 = vadd.xlane.f32.xlu1 %v1090_v17  ;;  %553 = vmatpush.bf16.msra.mxu0 %v787_v15 }
  0x3e   :  { %166 = vadd.xlane.f32.xlu0 %v142_v18  ;;  %99 = vadd.xlane.f32.xlu2 %v1099_v19  ;;  %v788_v18 = vld [vmem:[#allocation2 + $0x28] sm:$0xf0] }
  0x40   :  { %168 = vadd.xlane.f32.xlu1 %v143_v20  ;;  %v791_v20 = vor.u32 %v837_v13, %v788_v18 }
  0x42   :  { %602 = vmatpush.bf16.msra.mxu1 %v791_v20 }
  0x46   :  { %101 = vadd.xlane.f32.xlu0 %v1107_v21  ;;  %172 = vadd.xlane.f32.xlu2 %v145_v22  ;;  %v1146_v22 = vsel %vm116_vm0, %v859_v39, %v115_v8 }
  0x48   :  { %170 = vadd.xlane.f32.xlu1 %v144_v23  ;;  %v778_v23 = vld [vmem:[#allocation2 + $0x10] sm:$0xf] }
  0x4e   :  { %103 = vadd.xlane.f32.xlu0 %v1117_v24  ;;  %174 = vadd.xlane.f32.xlu2 %v146_v25  ;;  %v836_v25 = vld [vmem:[#allocation2 + $0x14] sm:$0xf0] }
  0x50   :  { %105 = vadd.xlane.f32.xlu1 %v1124_v26 }
  0x56   :  { %176 = vadd.xlane.f32.xlu0 %v147_v27  ;;  %109 = vadd.xlane.f32.xlu2 %v1133_v28  ;;  %v835_v27 = vld [vmem:[#allocation2 + $0x14] sm:$0xf] }
  0x58   :  { %107 = vadd.xlane.f32.xlu1 %v1138_v29 }
  0x5e   :  { %178 = vadd.xlane.f32.xlu0 %v148_v30  ;;  %v779_v30 = vor.u32 %v836_v25, %v778_v23 }
  0x60   :  { %180 = vadd.xlane.f32.xlu1 %v149_v31  ;;  %v780_v31 = vld [vmem:[#allocation2 + $0x18] sm:$0xf0]  ;;  %554 = vmatpush.bf16.msra.mxu0 %v779_v30 }
  0x61   :  { %v783_v34 = vor.u32 %v835_v27, %v780_v31 }
  0x63   :  { %603 = vmatpush.bf16.msra.mxu1 %v783_v34 }
  0x64   :  { %555 = vmatpush.bf16.msra.mxu0 %v771_v43 }
  0x67   :  { %604 = vmatpush.bf16.msra.mxu1 %v775_v44 }
  0x81   :  { %v80_v32 = vpop.xlane.xlu0 %79  ;;  %v84_v33 = vpop.xlane.xlu2 %83 }
  0x82   :  { %v1149_v35 = vmul.f32 %v1146_v22, %v80_v32  ;;  %v1158_v51 = vmul.f32 %v1146_v22, %v84_v33 }
  0x83   :  { %v151_v36 = vpop.xlane.xlu1 %150 }
  0x84   :  { %v198_v39 = vmul.f32 %v1149_v35, %v1149_v35  ;;  %v182_v42 = vmul.f32 %v151_v36, %v1146_v22  ;;  %v200_v56 = vmul.f32 %v1158_v51, %v1158_v51 }
  0x86   :  { %v214_v45 = vsub.f32 %v182_v42, %v198_v39 }
  0x88   :  { %v246_v46 = vadd.f32 1e-05, %v214_v45 }
  0x89   :  { %v82_v47 = vpop.xlane.xlu0 %81  ;;  %v86_v48 = vpop.xlane.xlu2 %85 }
  0x8a   :  { %v1155_v49 = vmul.f32 %v1146_v22, %v82_v47  ;;  %860 = vrsqrt.f32 %v246_v46  ;;  %v1164_v54 = vmul.f32 %v1146_v22, %v86_v48  ;;  %vm268_vm2 = vweird.f32 %v246_v46 }
  0x8b   :  { %v153_v50 = vpop.xlane.xlu1 %152 }
  0x8c   :  { %v199_v52 = vmul.f32 %v1155_v49, %v1155_v49  ;;  %v183_v53 = vmul.f32 %v153_v50, %v1146_v22  ;;  %v201_v63 = vmul.f32 %v1164_v54, %v1164_v54 }
  0x8e   :  { %v215_v55 = vsub.f32 %v183_v53, %v199_v52 }
  0x90   :  { %v1168_v57 = vpop.eup %860  ;;  %v247_v58 = vadd.f32 1e-05, %v215_v55 }
  0x91   :  { %v155_v59 = vpop.xlane.xlu0 %154  ;;  %v88_v60 = vpop.xlane.xlu2 %87  ;;  %v263_v61 = vmul.f32 %v1168_v57, %v246_v46  ;;  %vm269_vm1 = vweird.f32 %v1168_v57 }
  0x92   :  { %v184_v62 = vmul.f32 %v155_v59, %v1146_v22  ;;  %862 = vrsqrt.f32 %v247_v58  ;;  %v1179_v11 = vmul.f32 %v1146_v22, %v88_v60  ;;  %vm1208_vm3 = vmor %vm268_vm2, %vm269_vm1  ;;  %vm278_vm5 = vweird.f32 %v247_v58 }
  0x93   :  { %v157_v2 = vpop.xlane.xlu1 %156  ;;  %v264_v5 = vmul.f32 %v1168_v57, %v263_v61 }
  0x94   :  { %v216_v6 = vsub.f32 %v184_v62, %v200_v56  ;;  %v185_v8 = vmul.f32 %v157_v2, %v1146_v22  ;;  %v202_v30 = vmul.f32 %v1179_v11, %v1179_v11  ;;  %v230_v62 = vsub.f32 %v1021_v0, %v1149_v35 }
  0x95   :  { %v265_v13 = vmul.f32 0.5, %v264_v5 }
  0x96   :  { %v1176_v10 = vadd.f32 1e-05, %v216_v6  ;;  %v217_v15 = vsub.f32 %v185_v8, %v201_v63  ;;  %v231_v63 = vsub.f32 %v1035_v3, %v1155_v49 }
  0x97   :  { %v266_v33 = vsub.f32 1.5, %v265_v13 }
  0x98   :  { %864 = vrsqrt.f32 %v1176_v10  ;;  %v863_v18 = vpop.eup %862  ;;  %v1182_v20 = vadd.f32 1e-05, %v217_v15  ;;  %vm288_vm11 = vweird.f32 %v1176_v10 }
  0x99   :  { %v90_v23 = vpop.xlane.xlu0 %89  ;;  %v161_v25 = vpop.xlane.xlu2 %160  ;;  %v273_v27 = vmul.f32 %v863_v18, %v247_v58  ;;  %v267_v43 = vmul.f32 %v1168_v57, %v266_v33  ;;  %vm279_vm4 = vweird.f32 %v863_v18 }
  0x9a   :  { %v1187_v31 = vmul.f32 %v1146_v22, %v90_v23  ;;  %v187_v32 = vmul.f32 %v161_v25, %v1146_v22  ;;  %866 = vrsqrt.f32 %v1182_v20  ;;  %vm280_vm6 = vmor %vm278_vm5, %vm279_vm4  ;;  %vm298_vm7 = vweird.f32 %v1182_v20 }
  0x9b   :  { %v159_v34 = vpop.xlane.xlu1 %158  ;;  %v274_v36 = vmul.f32 %v863_v18, %v273_v27  ;;  %v271_v59 = vsel %vm1208_vm3, %v1168_v57, %v267_v43 }
  0x9c   :  { %v203_v37 = vmul.f32 %v1187_v31, %v1187_v31  ;;  %v186_v38 = vmul.f32 %v159_v34, %v1146_v22  ;;  %v422_v6 = vmul.f32 %v271_v59, %v230_v62 }
  0x9d   :  { %v275_v39 = vmul.f32 0.5, %v274_v36 }
  0x9e   :  { %v1194_v40 = vpop.eup %864  ;;  %v219_v41 = vsub.f32 %v187_v32, %v203_v37  ;;  %v218_v42 = vsub.f32 %v186_v38, %v202_v30 }
  0x9f   :  { %v276_v44 = vsub.f32 1.5, %v275_v39  ;;  %v283_v45 = vmul.f32 %v1194_v40, %v1176_v10  ;;  %vm289_vm9 = vweird.f32 %v1194_v40 }
  0xa0   :  { %v1200_v47 = vadd.f32 1e-05, %v219_v41  ;;  %v1202_v48 = vpop.eup %866  ;;  %v1204_v50 = vadd.f32 1e-05, %v218_v42  ;;  %vm290_vm12 = vmor %vm288_vm11, %vm289_vm9 }
  0xa1   :  { %v92_v52 = vpop.xlane.xlu0 %91  ;;  %v293_v53 = vmul.f32 %v1202_v48, %v1182_v20  ;;  %v284_v60 = vmul.f32 %v1194_v40, %v283_v45  ;;  %v277_v61 = vmul.f32 %v863_v18, %v276_v44  ;;  %v163_v15 = vpop.xlane.xlu2 %162  ;;  %vm299_vm8 = vweird.f32 %v1202_v48 }
  0xa2   :  { %868 = vrsqrt.f32 %v1200_v47  ;;  %v1227_v5 = vmul.f32 %v1146_v22, %v92_v52  ;;  %v188_v30 = vmul.f32 %v163_v15, %v1146_v22  ;;  %vm300_vm10 = vmor %vm298_vm7, %vm299_vm8  ;;  %v233_v52 = vsub.f32 %v1040_v4, %v1164_v54 }
  0xa3   :  { %v94_v56 = vpop.xlane.xlu1 %93  ;;  %v294_v46 = vmul.f32 %v1202_v48, %v293_v53  ;;  %870 = vrsqrt.f32 %v1204_v50  ;;  %v281_v2 = vsel %vm280_vm6, %v863_v18, %v277_v61  ;;  %v285_v13 = vmul.f32 0.5, %v284_v60 }
  0xa4   :  { %v1224_v58 = vmul.f32 %v1146_v22, %v94_v56  ;;  %v423_v8 = vmul.f32 %v281_v2, %v231_v63  ;;  %v204_v18 = vmul.f32 %v1227_v5, %v1227_v5  ;;  %v232_v56 = vsub.f32 %v1026_v1, %v1158_v51 }
  0xa5   :  { %v295_v57 = vmul.f32 0.5, %v294_v46  ;;  %v286_v32 = vsub.f32 1.5, %v285_v13  ;;  %vm318_vm13 = vweird.f32 %v1200_v47  ;;  %vm308_vm15 = vweird.f32 %v1204_v50 }
  0xa6   :  { %v205_v0 = vmul.f32 %v1224_v58, %v1224_v58  ;;  %v438_v35 = vpack.c.bf16 %v423_v8, %v422_v6  ;;  %v220_v39 = vsub.f32 %v188_v30, %v204_v18 }
  0xa7   :  { %v296_v23 = vsub.f32 1.5, %v295_v57  ;;  %v287_v41 = vmul.f32 %v1194_v40, %v286_v32 }
  0xa8   :  { %v1231_v49 = vpop.eup %868  ;;  %556 = vmatmul.bf16.vlgmr.msra.gmra.mxu0 %v438_v35  ;;  %605 = vmatmul.bf16.vlgmr.msra.gmra.mxu1 %v438_v35  ;;  %v1256_v53 = vadd.f32 1e-05, %v220_v39 }
  0xa9   :  { %v165_v3 = vpop.xlane.xlu0 %164  ;;  %v1234_v27 = vpop.eup %870  ;;  %v313_v36 = vmul.f32 %v1231_v49, %v1200_v47  ;;  %v297_v38 = vmul.f32 %v1202_v48, %v296_v23  ;;  %v291_v55 = vsel %vm290_vm12, %v1194_v40, %v287_v41  ;;  %vm319_vm14 = vweird.f32 %v1231_v49 }
  0xaa   :  { %v189_v25 = vmul.f32 %v165_v3, %v1146_v22  ;;  %v303_v37 = vmul.f32 %v1234_v27, %v1204_v50  ;;  %v98_v43 = vpop.xlane.xlu2 %97  ;;  %v424_v54 = vmul.f32 %v291_v55, %v232_v56  ;;  %vm309_vm0 = vweird.f32 %v1234_v27  ;;  %vm1287_vm1 = vmor %vm318_vm13, %vm319_vm14 }
  0xab   :  { %v96_v33 = vpop.xlane.xlu1 %95  ;;  %v314_v20 = vmul.f32 %v1231_v49, %v313_v36  ;;  %v301_v45 = vsel %vm300_vm10, %v1202_v48, %v297_v38  ;;  %v1263_v10 = vmul.f32 %v1146_v22, %v98_v43  ;;  %vm310_vm2 = vmor %vm308_vm15, %vm309_vm0  ;;  %v235_v36 = vsub.f32 %v1059_v9, %v1187_v31 }
  0xac   :  { %v221_v34 = vsub.f32 %v189_v25, %v205_v0  ;;  %v304_v44 = vmul.f32 %v1234_v27, %v303_v37  ;;  %v425_v59 = vmul.f32 %v301_v45, %v233_v52  ;;  %v1267_v4 = vmul.f32 %v1146_v22, %v96_v33 }
  0xad   :  { %v315_v60 = vmul.f32 0.5, %v314_v20  ;;  %v207_v40 = vmul.f32 %v1263_v10, %v1263_v10  ;;  %vm328_vm5 = vweird.f32 %v1256_v53 }
  0xae   :  { %v1248_v42 = vadd.f32 1e-05, %v221_v34  ;;  %v305_v46 = vmul.f32 0.5, %v304_v44  ;;  %v439_v51 = vpack.c.bf16 %v425_v59, %v424_v54  ;;  %v206_v2 = vmul.f32 %v1267_v4, %v1267_v4 }
  0xaf   :  { %v316_v62 = vsub.f32 1.5, %v315_v60  ;;  %v234_v34 = vsub.f32 %v1051_v7, %v1179_v11 }
  0xb0   :  { %872 = vrsqrt.f32 %v1248_v42  ;;  %v306_v63 = vsub.f32 1.5, %v305_v46  ;;  %vm338_vm3 = vweird.f32 %v1248_v42 }
  0xb1   :  { %874 = vrsqrt.f32 %v1256_v53  ;;  %v167_v61 = vpop.xlane.xlu0 %166  ;;  %v317_v3 = vmul.f32 %v1231_v49, %v316_v62 }
  0xb2   :  { %v190_v6 = vmul.f32 %v167_v61, %v1146_v22  ;;  %v100_v8 = vpop.xlane.xlu2 %99  ;;  %v307_v35 = vmul.f32 %v1234_v27, %v306_v63 }
  0xb3   :  { %v169_v48 = vpop.xlane.xlu1 %168  ;;  %v321_v33 = vsel %vm1287_vm1, %v1231_v49, %v317_v3 }
  0xb4   :  { %v191_v1 = vmul.f32 %v169_v48, %v1146_v22  ;;  %v222_v23 = vsub.f32 %v190_v6, %v206_v2  ;;  %v311_v32 = vsel %vm310_vm2, %v1234_v27, %v307_v35  ;;  %v1312_v27 = vmul.f32 %v1146_v22, %v100_v8 }
  0xb5   :  { %v426_v49 = vmul.f32 %v311_v32, %v234_v34  ;;  %v427_v43 = vmul.f32 %v321_v33, %v235_v36 }
  0xb6   :  { %v1272_v57 = vpop.eup %872  ;;  %v223_v15 = vsub.f32 %v191_v1, %v207_v40  ;;  %v1304_v37 = vadd.f32 1e-05, %v222_v23  ;;  %v208_v44 = vmul.f32 %v1312_v27, %v1312_v27  ;;  %v236_v23 = vsub.f32 %v1069_v12, %v1227_v5 }
  0xb7   :  { %v1279_v13 = vpop.eup %874  ;;  %v333_v0 = vmul.f32 %v1272_v57, %v1248_v42  ;;  %v440_v52 = vpack.c.bf16 %v427_v43, %v426_v49  ;;  %vm339_vm4 = vweird.f32 %v1272_v57 }
  0xb8   :  { %561 = vmatmul.bf16.gmra.mxu0 %v439_v51  ;;  %610 = vmatmul.bf16.gmra.mxu1 %v439_v51  ;;  %v323_v47 = vmul.f32 %v1279_v13, %v1256_v53  ;;  %v1293_v18 = vadd.f32 1e-05, %v223_v15  ;;  %vm329_vm6 = vweird.f32 %v1279_v13  ;;  %vm1332_vm7 = vmor %vm338_vm3, %vm339_vm4  ;;  %v237_v15 = vsub.f32 %v1076_v14, %v1224_v58 }
  0xb9   :  { %v102_v50 = vpop.xlane.xlu0 %101  ;;  %v334_v30 = vmul.f32 %v1272_v57, %v333_v0  ;;  %vm1343_vm8 = vmor %vm328_vm5, %vm329_vm6  ;;  %vm348_vm11 = vweird.f32 %v1304_v37 }
  0xba   :  { %v324_v38 = vmul.f32 %v1279_v13, %v323_v47  ;;  %v1308_v39 = vmul.f32 %v1146_v22, %v102_v50  ;;  %876 = vrsqrt.f32 %v1293_v18  ;;  %v173_v41 = vpop.xlane.xlu2 %172  ;;  %vm358_vm9 = vweird.f32 %v1293_v18 }
  0xbb   :  { %v335_v20 = vmul.f32 0.5, %v334_v30  ;;  %v171_v7 = vpop.xlane.xlu1 %170  ;;  %878 = vrsqrt.f32 %v1304_v37  ;;  %v193_v31 = vmul.f32 %v173_v41, %v1146_v22 }
  0xbc   :  { %v325_v9 = vmul.f32 0.5, %v324_v38  ;;  %v209_v11 = vmul.f32 %v1308_v39, %v1308_v39  ;;  %v192_v45 = vmul.f32 %v171_v7, %v1146_v22 }
  0xbd   :  { %v336_v55 = vsub.f32 1.5, %v335_v20 }
  0xbe   :  { %v326_v59 = vsub.f32 1.5, %v325_v9  ;;  %v225_v60 = vsub.f32 %v193_v31, %v209_v11  ;;  %v224_v54 = vsub.f32 %v192_v45, %v208_v44 }
  0xbf   :  { %v337_v40 = vmul.f32 %v1272_v57, %v336_v55 }
  0xc0   :  { %v1321_v56 = vpop.eup %876  ;;  %v1338_v51 = vadd.f32 1e-05, %v225_v60  ;;  %v327_v62 = vmul.f32 %v1279_v13, %v326_v59  ;;  %v1341_v63 = vadd.f32 1e-05, %v224_v54 }
  0xc1   :  { %v104_v46 = vpop.xlane.xlu0 %103  ;;  %v1325_v48 = vpop.eup %878  ;;  %v353_v61 = vmul.f32 %v1321_v56, %v1293_v18  ;;  %v341_v8 = vsel %vm1332_vm7, %v1272_v57, %v337_v40  ;;  %vm359_vm10 = vweird.f32 %v1321_v56 }
  0xc2   :  { %v343_v42 = vmul.f32 %v1325_v48, %v1304_v37  ;;  %880 = vrsqrt.f32 %v1338_v51  ;;  %v1356_v35 = vmul.f32 %v1146_v22, %v104_v46  ;;  %v331_v3 = vsel %vm1343_vm8, %v1279_v13, %v327_v62  ;;  %v175_v14 = vpop.xlane.xlu2 %174  ;;  %vm1386_vm13 = vmor %vm358_vm9, %vm359_vm10 }
  0xc3   :  { %v354_v2 = vmul.f32 %v1321_v56, %v353_v61  ;;  %v106_v6 = vpop.xlane.xlu1 %105  ;;  %882 = vrsqrt.f32 %v1341_v63  ;;  %v429_v58 = vmul.f32 %v341_v8, %v237_v15  ;;  %v428_v50 = vmul.f32 %v331_v3, %v236_v23 }
  0xc4   :  { %v344_v0 = vmul.f32 %v1325_v48, %v343_v42  ;;  %v1365_v57 = vmul.f32 %v1146_v22, %v106_v6  ;;  %v210_v32 = vmul.f32 %v1356_v35, %v1356_v35  ;;  %v194_v33 = vmul.f32 %v175_v14, %v1146_v22 }
  0xc5   :  { %v355_v25 = vmul.f32 0.5, %v354_v2  ;;  %v441_v5 = vpack.c.bf16 %v429_v58, %v428_v50  ;;  %vm349_vm12 = vweird.f32 %v1325_v48  ;;  %v239_v37 = vsub.f32 %v1085_v16, %v1263_v10 }
  0xc6   :  { %v345_v30 = vmul.f32 0.5, %v344_v0  ;;  %v211_v13 = vmul.f32 %v1365_v57, %v1365_v57  ;;  %v226_v49 = vsub.f32 %v194_v33, %v210_v32  ;;  %vm1397_vm14 = vmor %vm348_vm11, %vm349_vm12  ;;  %v238_v10 = vsub.f32 %v1090_v17, %v1267_v4 }
  0xc7   :  { %v356_v36 = vsub.f32 1.5, %v355_v25  ;;  %vm378_vm15 = vweird.f32 %v1338_v51  ;;  %vm368_vm1 = vweird.f32 %v1341_v63  ;;  %v240_v50 = vsub.f32 %v1099_v19, %v1312_v27 }
  0xc8   :  { %566 = vmatmul.bf16.gmra.mxu0 %v440_v52  ;;  %615 = vmatmul.bf16.gmra.mxu1 %v440_v52  ;;  %v1373_v34 = vpop.eup %880  ;;  %v346_v41 = vsub.f32 1.5, %v345_v30  ;;  %v1390_v18 = vadd.f32 1e-05, %v226_v49 }
  0xc9   :  { %v177_v47 = vpop.xlane.xlu0 %176  ;;  %v1375_v38 = vpop.eup %882  ;;  %v373_v7 = vmul.f32 %v1373_v34, %v1338_v51  ;;  %v357_v11 = vmul.f32 %v1321_v56, %v356_v36  ;;  %vm379_vm0 = vweird.f32 %v1373_v34 }
  0xca   :  { %v195_v12 = vmul.f32 %v177_v47, %v1146_v22  ;;  %v363_v9 = vmul.f32 %v1375_v38, %v1341_v63  ;;  %v347_v44 = vmul.f32 %v1325_v48, %v346_v41  ;;  %v110_v60 = vpop.xlane.xlu2 %109  ;;  %884 = vrsqrt.f32 %v1390_v18  ;;  %vm380_vm3 = vmor %vm378_vm15, %vm379_vm0 }
  0xcb   :  { %v108_v43 = vpop.xlane.xlu1 %107  ;;  %v374_v55 = vmul.f32 %v1373_v34, %v373_v7  ;;  %v361_v46 = vsel %vm1386_vm13, %v1321_v56, %v357_v11  ;;  %v1417_v61 = vmul.f32 %v1146_v22, %v110_v60  ;;  %vm369_vm2 = vweird.f32 %v1375_v38 }
  0xcc   :  { %v227_v20 = vsub.f32 %v195_v12, %v211_v13  ;;  %v364_v59 = vmul.f32 %v1375_v38, %v363_v9  ;;  %v1408_v54 = vmul.f32 %v1146_v22, %v108_v43  ;;  %v351_v16 = vsel %vm1397_vm14, %v1325_v48, %v347_v44  ;;  %vm370_vm4 = vmor %vm368_vm1, %vm369_vm2 }
  0xcd   :  { %v431_v1 = vmul.f32 %v361_v46, %v239_v37  ;;  %v375_v56 = vmul.f32 0.5, %v374_v55  ;;  %v430_v53 = vmul.f32 %v351_v16, %v238_v10  ;;  %v213_v48 = vmul.f32 %v1417_v61, %v1417_v61 }
  0xce   :  { %v1395_v45 = vadd.f32 1e-05, %v227_v20  ;;  %v365_v42 = vmul.f32 0.5, %v364_v59  ;;  %v212_v2 = vmul.f32 %v1408_v54, %v1408_v54  ;;  %v241_v63 = vsub.f32 %v1107_v21, %v1308_v39 }
  0xcf   :  { %v442_v4 = vpack.c.bf16 %v431_v1, %v430_v53  ;;  %v376_v15 = vsub.f32 1.5, %v375_v56  ;;  %vm388_vm5 = vweird.f32 %v1390_v18  ;;  %v242_v9 = vsub.f32 %v1117_v24, %v1356_v35 }
  0xd0   :  { %886 = vrsqrt.f32 %v1395_v45  ;;  %v885_v8 = vpop.eup %884  ;;  %v366_v0 = vsub.f32 1.5, %v365_v42  ;;  %vm398_vm7 = vweird.f32 %v1395_v45  ;;  %v243_v11 = vsub.f32 %v1124_v26, %v1365_v57 }
  0xd1   :  { %v179_v40 = vpop.xlane.xlu0 %178  ;;  %v383_v58 = vmul.f32 %v885_v8, %v1390_v18  ;;  %v377_v47 = vmul.f32 %v1373_v34, %v376_v15  ;;  %vm389_vm6 = vweird.f32 %v885_v8  ;;  %v244_v35 = vsub.f32 %v1138_v29, %v1408_v54 }
  0xd2   :  { %v196_v6 = vmul.f32 %v179_v40, %v1146_v22  ;;  %v367_v25 = vmul.f32 %v1375_v38, %v366_v0  ;;  %vm390_vm9 = vmor %vm388_vm5, %vm389_vm6  ;;  %v245_v57 = vsub.f32 %v1133_v28, %v1417_v61 }
  0xd3   :  { %v181_v62 = vpop.xlane.xlu1 %180  ;;  %v384_v32 = vmul.f32 %v885_v8, %v383_v58  ;;  %v381_v12 = vsel %vm380_vm3, %v1373_v34, %v377_v47 }
  0xd4   :  { %v197_v17 = vmul.f32 %v181_v62, %v1146_v22  ;;  %v228_v23 = vsub.f32 %v196_v6, %v212_v2  ;;  %v371_v13 = vsel %vm370_vm4, %v1375_v38, %v367_v25  ;;  %v433_v36 = vmul.f32 %v381_v12, %v241_v63  ;;  %v462_v62 = vld [vmem:[#allocation4] sm:$0x3] }
  0xd5   :  { %v385_v41 = vmul.f32 0.5, %v384_v32  ;;  %v1449_v6 = vperm.slane %v462_v62, 0 }
  0xd6   :  { %v887_v3 = vpop.eup %886  ;;  %v229_v14 = vsub.f32 %v197_v17, %v213_v48  ;;  %v260_v51 = vadd.f32 1e-05, %v228_v23  ;;  %v1451_v48 = vperm.slane %v462_v62, 1 }
  0xd7   :  { %v393_v22 = vmul.f32 %v887_v3, %v1395_v45  ;;  %v386_v7 = vsub.f32 1.5, %v385_v41  ;;  %vm399_vm8 = vweird.f32 %v887_v3 }
  0xd8   :  { %571 = vmatmul.bf16.gmra.mxu0 %v441_v5  ;;  %620 = vmatmul.bf16.gmra.mxu1 %v441_v5  ;;  %v261_v30 = vadd.f32 1e-05, %v229_v14  ;;  %888 = vrsqrt.f32 %v260_v51  ;;  %v432_v5 = vmul.f32 %v371_v13, %v240_v50  ;;  %vm400_vm10 = vmor %vm398_vm7, %vm399_vm8  ;;  %vm408_vm11 = vweird.f32 %v260_v51 }
  0xd9   :  { %v394_v33 = vmul.f32 %v887_v3, %v393_v22  ;;  %v387_v34 = vmul.f32 %v885_v8, %v386_v7 }
  0xda   :  { %890 = vrsqrt.f32 %v261_v30  ;;  %v443_v43 = vpack.c.bf16 %v433_v36, %v432_v5  ;;  %vm418_vm13 = vweird.f32 %v261_v30 }
  0xdb   :  { %v395_v49 = vmul.f32 0.5, %v394_v33  ;;  %v391_v44 = vsel %vm390_vm9, %v885_v8, %v387_v34 }
  0xdc   :  { %v434_v52 = vmul.f32 %v391_v44, %v242_v9 }
  0xdd   :  { %v396_v19 = vsub.f32 1.5, %v395_v49 }
  0xde   :  { %v889_v20 = vpop.eup %888 }
  0xdf   :  { %v403_v21 = vmul.f32 %v889_v20, %v260_v51  ;;  %v397_v38 = vmul.f32 %v887_v3, %v396_v19  ;;  %vm409_vm12 = vweird.f32 %v889_v20 }
  0xe0   :  { %v891_v27 = vpop.eup %890  ;;  %vm410_vm15 = vmor %vm408_vm11, %vm409_vm12 }
  0xe1   :  { %v413_v39 = vmul.f32 %v891_v27, %v261_v30  ;;  %v404_v31 = vmul.f32 %v889_v20, %v403_v21  ;;  %v401_v37 = vsel %vm400_vm10, %v887_v3, %v397_v38  ;;  %vm419_vm14 = vweird.f32 %v891_v27 }
  0xe2   :  { %v435_v55 = vmul.f32 %v401_v37, %v243_v11  ;;  %vm420_vm0 = vmor %vm418_vm13, %vm419_vm14 }
  0xe3   :  { %v414_v18 = vmul.f32 %v891_v27, %v413_v39  ;;  %v405_v45 = vmul.f32 0.5, %v404_v31 }
  0xe4   :  { %v444_v60 = vpack.c.bf16 %v435_v55, %v434_v52 }
  0xe5   :  { %v415_v59 = vmul.f32 0.5, %v414_v18  ;;  %v406_v46 = vsub.f32 1.5, %v405_v45 }
  0xe7   :  { %v416_v16 = vsub.f32 1.5, %v415_v59  ;;  %v407_v24 = vmul.f32 %v889_v20, %v406_v46 }
  0xe8   :  { %576 = vmatmul.bf16.gmra.mxu0 %v442_v4  ;;  %625 = vmatmul.bf16.gmra.mxu1 %v442_v4 }
  0xe9   :  { %v417_v26 = vmul.f32 %v891_v27, %v416_v16  ;;  %v411_v10 = vsel %vm410_vm15, %v889_v20, %v407_v24 }
  0xea   :  { %v436_v1 = vmul.f32 %v411_v10, %v244_v35 }
  0xeb   :  { %v421_v40 = vsel %vm420_vm0, %v891_v27, %v417_v26 }
  0xec   :  { %v437_v56 = vmul.f32 %v421_v40, %v245_v57 }
  0xee   :  { %v445_v42 = vpack.c.bf16 %v437_v56, %v436_v1 }
  0xf8   :  { %581 = vmatmul.bf16.gmra.mxu0 %v443_v43  ;;  %630 = vmatmul.bf16.gmra.mxu1 %v443_v43 }
 0x108   :  { %586 = vmatmul.bf16.gmra.mxu0 %v444_v60  ;;  %635 = vmatmul.bf16.gmra.mxu1 %v444_v60 }
 0x118   :  { %591 = vmatmul.bf16.gmra.mxu0 %v445_v42  ;;  %640 = vmatmul.bf16.gmra.mxu1 %v445_v42 }
 0x125   :  { %v557_v53 = vpop.f32.mrf.mxu0  ;;  %v606_v2 = vpop.f32.mrf.mxu1 }
 0x126   :  { %v558_v17 = vadd.f32 %v557_v53, %v1449_v6  ;;  %v607_v29 = vadd.f32 %v606_v2, %v1451_v48 }
 0x128   :  { %v646_v8 = vmax.f32 %v558_v17, 0.0  ;;  %v647_v15 = vmax.f32 %v607_v29, 0.0 }
 0x12d   :  { %v559_v54 = vpop.f32.mrf.mxu0  ;;  %v608_v28 = vpop.f32.mrf.mxu1 }
 0x12e   :  { %v560_v61 = vadd.f32 %v559_v54, %v1449_v6  ;;  %v609_v4 = vadd.f32 %v608_v28, %v1451_v48 }
 0x130   :  { %v648_v0 = vmax.f32 %v560_v61, 0.0  ;;  %v649_v3 = vmax.f32 %v609_v4, 0.0 }
 0x132   :  { %v1457_v23 = vpack.c.bf16 %v648_v0, %v646_v8  ;;  %v1459_v14 = vpack.c.bf16 %v649_v3, %v647_v15 }
 0x135   :  { %v562_v58 = vpop.f32.mrf.mxu0  ;;  %v611_v22 = vpop.f32.mrf.mxu1 }
 0x136   :  { %v563_v25 = vadd.f32 %v562_v58, %v1449_v6  ;;  %v612_v47 = vadd.f32 %v611_v22, %v1451_v48 }
 0x138   :  { %v650_v32 = vmax.f32 %v563_v25, 0.0  ;;  %v651_v33 = vmax.f32 %v612_v47, 0.0 }
 0x13d   :  { %v564_v51 = vpop.f32.mrf.mxu0  ;;  %v613_v50 = vpop.f32.mrf.mxu1 }
 0x13e   :  { %v565_v63 = vadd.f32 %v564_v51, %v1449_v6  ;;  %v614_v30 = vadd.f32 %v613_v50, %v1451_v48 }
 0x140   :  { %v652_v13 = vmax.f32 %v565_v63, 0.0  ;;  %v653_v12 = vmax.f32 %v614_v30, 0.0 }
 0x142   :  { %v1465_v5 = vpack.c.bf16 %v652_v13, %v650_v32  ;;  %v1467_v36 = vpack.c.bf16 %v653_v12, %v651_v33 }
 0x145   :  { %v567_v41 = vpop.f32.mrf.mxu0  ;;  %v616_v49 = vpop.f32.mrf.mxu1 }
 0x146   :  { %v568_v43 = vadd.f32 %v567_v41, %v1449_v6  ;;  %v617_v20 = vadd.f32 %v616_v49, %v1451_v48 }
 0x148   :  { %v654_v39 = vmax.f32 %v568_v43, 0.0  ;;  %v655_v34 = vmax.f32 %v617_v20, 0.0 }
 0x14d   :  { %v569_v7 = vpop.f32.mrf.mxu0  ;;  %v618_v19 = vpop.f32.mrf.mxu1 }
 0x14e   :  { %v570_v27 = vadd.f32 %v569_v7, %v1449_v6  ;;  %v619_v21 = vadd.f32 %v618_v19, %v1451_v48 }
 0x150   :  { %v656_v38 = vmax.f32 %v570_v27, 0.0  ;;  %v657_v9 = vmax.f32 %v619_v21, 0.0 }
 0x152   :  { %v1473_v11 = vpack.c.bf16 %v656_v38, %v654_v39  ;;  %v1475_v31 = vpack.c.bf16 %v657_v9, %v655_v34 }
 0x155   :  { %v572_v18 = vpop.f32.mrf.mxu0  ;;  %v621_v44 = vpop.f32.mrf.mxu1 }
 0x156   :  { %v573_v37 = vadd.f32 %v572_v18, %v1449_v6  ;;  %v622_v52 = vadd.f32 %v621_v44, %v1451_v48 }
 0x158   :  { %v658_v46 = vmax.f32 %v573_v37, 0.0  ;;  %v659_v16 = vmax.f32 %v622_v52, 0.0 }
 0x15d   :  { %v574_v55 = vpop.f32.mrf.mxu0  ;;  %v623_v45 = vpop.f32.mrf.mxu1 }
 0x15e   :  { %v575_v59 = vadd.f32 %v574_v55, %v1449_v6  ;;  %v624_v60 = vadd.f32 %v623_v45, %v1451_v48 }
 0x160   :  { %v660_v24 = vmax.f32 %v575_v59, 0.0  ;;  %v661_v26 = vmax.f32 %v624_v60, 0.0 }
 0x162   :  { %v1481_v35 = vpack.c.bf16 %v660_v24, %v658_v46  ;;  %v1483_v57 = vpack.c.bf16 %v661_v26, %v659_v16 }
 0x165   :  { %v577_v10 = vpop.f32.mrf.mxu0  ;;  %v626_v40 = vpop.f32.mrf.mxu1 }
 0x166   :  { %v578_v1 = vadd.f32 %v577_v10, %v1449_v6  ;;  %v627_v56 = vadd.f32 %v626_v40, %v1451_v48 }
 0x168   :  { %v662_v17 = vmax.f32 %v578_v1, 0.0  ;;  %v663_v29 = vmax.f32 %v627_v56, 0.0  ;;  %v695_v1 = vld [vmem:[%s1519_s4] sm:$0xff] }
 0x16d   :  { %v579_v42 = vpop.f32.mrf.mxu0  ;;  %v628_v62 = vpop.f32.mrf.mxu1 }
 0x16e   :  { %v580_v53 = vadd.f32 %v579_v42, %v1449_v6  ;;  %v629_v2 = vadd.f32 %v628_v62, %v1451_v48 }
 0x170   :  { %v664_v54 = vmax.f32 %v580_v53, 0.0  ;;  %v665_v28 = vmax.f32 %v629_v2, 0.0 }
 0x172   :  { %v687_v61 = vpack.c.bf16 %v664_v54, %v662_v17  ;;  %v688_v4 = vpack.c.bf16 %v665_v28, %v663_v29  ;;  %v753_v54 = vlaneseq }
 0x175   :  { %v582_v8 = vpop.f32.mrf.mxu0  ;;  %v631_v15 = vpop.f32.mrf.mxu1 }
 0x176   :  { %v583_v59 = vadd.f32 %v582_v8, %v1449_v6  ;;  %v632_v60 = vadd.f32 %v631_v15, %v1451_v48 }
 0x178   :  { %v666_v24 = vmax.f32 %v583_v59, 0.0  ;;  %v667_v26 = vmax.f32 %v632_v60, 0.0 }
 0x17d   :  { %v584_v0 = vpop.f32.mrf.mxu0  ;;  %v633_v3 = vpop.f32.mrf.mxu1 }
 0x17e   :  { %v585_v37 = vadd.f32 %v584_v0, %v1449_v6  ;;  %v634_v52 = vadd.f32 %v633_v3, %v1451_v48 }
 0x180   :  { %v668_v46 = vmax.f32 %v585_v37, 0.0  ;;  %v669_v16 = vmax.f32 %v634_v52, 0.0 }
 0x182   :  { %v689_v10 = vpack.c.bf16 %v668_v46, %v666_v24  ;;  %v690_v40 = vpack.c.bf16 %v669_v16, %v667_v26 }
 0x185   :  { %v587_v58 = vpop.f32.mrf.mxu0  ;;  %v636_v22 = vpop.f32.mrf.mxu1 }
 0x186   :  { %v588_v39 = vadd.f32 %v587_v58, %v1449_v6  ;;  %v637_v34 = vadd.f32 %v636_v22, %v1451_v48 }
 0x188   :  { %v670_v18 = vmax.f32 %v588_v39, 0.0  ;;  %v671_v44 = vmax.f32 %v637_v34, 0.0 }
 0x18d   :  { %v589_v25 = vpop.f32.mrf.mxu0  ;;  %v638_v47 = vpop.f32.mrf.mxu1 }
 0x18e   :  { %v590_v7 = vadd.f32 %v589_v25, %v1449_v6  ;;  %v639_v19 = vadd.f32 %v638_v47, %v1451_v48 }
 0x190   :  { %v672_v38 = vmax.f32 %v590_v7, 0.0  ;;  %v673_v9 = vmax.f32 %v639_v19, 0.0 }
 0x192   :  { %v691_v55 = vpack.c.bf16 %v672_v38, %v670_v18  ;;  %v692_v45 = vpack.c.bf16 %v673_v9, %v671_v44 }
 0x195   :  { %v592_v51 = vpop.f32.mrf.mxu0  ;;  %v641_v50 = vpop.f32.mrf.mxu1 }
 0x196   :  { %v593_v63 = vadd.f32 %v592_v51, %v1449_v6  ;;  %v642_v30 = vadd.f32 %v641_v50, %v1451_v48 }
 0x198   :  { %v674_v41 = vmax.f32 %v593_v63, 0.0  ;;  %v675_v49 = vmax.f32 %v642_v30, 0.0 }
 0x19d   :  { %v594_v32 = vpop.f32.mrf.mxu0  ;;  %v643_v33 = vpop.f32.mrf.mxu1 }
 0x19e   :  { %v595_v13 = vadd.f32 %v594_v32, %v1449_v6  ;;  %v644_v12 = vadd.f32 %v643_v33, %v1451_v48  ;;  %v978_v6 = vmov 0   ;;  %v678_v48 = vld [vmem:[#allocation6] sm:$0xff] }
 0x19f   :  { %856 = vset.pattern.permute.xlu2 %v978_v6  ;;  %857 = vset.pattern.permute.xlu0 %v978_v6  ;;  %v702_v56 = vunpack.c.l.b16 %v678_v48  ;;  %v703_v42 = vunpack.c.h.b16 %v678_v48 }
 0x1a0   :  { %v676_v43 = vmax.f32 %v595_v13, 0.0  ;;  %v677_v20 = vmax.f32 %v644_v12, 0.0  ;;  %698 = vperm.xlu2 %856, %v695_v1  }
 0x1a2   :  { %v693_v27 = vpack.c.bf16 %v676_v43, %v674_v41  ;;  %v694_v21 = vpack.c.bf16 %v677_v20, %v675_v49 }
 0x1a4   :  { %708 = vmatpush.bf16.xpose.msra.mxu2 %v693_v27  ;;  %721 = vmatpush.bf16.xpose.msra.mxu3 %v694_v21 }
 0x1ac   :  { %709 = vmatpush.bf16.xpose.msra.mxu2 %v691_v55  ;;  %722 = vmatpush.bf16.xpose.msra.mxu3 %v692_v45 }
 0x1b4   :  { %710 = vmatpush.bf16.xpose.msra.mxu2 %v689_v10  ;;  %723 = vmatpush.bf16.xpose.msra.mxu3 %v690_v40 }
 0x1bc   :  { %711 = vmatpush.bf16.xpose.msra.mxu2 %v687_v61  ;;  %724 = vmatpush.bf16.xpose.msra.mxu3 %v688_v4 }
 0x1c4   :  { %712 = vmatpush.bf16.xpose.msra.mxu2 %v1481_v35  ;;  %725 = vmatpush.bf16.xpose.msra.mxu3 %v1483_v57  ;;  %v704_v35 = vpack.c.b16 %v702_v56, %v702_v56  ;;  %v705_v57 = vpack.c.b16 %v703_v42, %v703_v42 }
 0x1cc   :  { %713 = vmatpush.bf16.xpose.msra.mxu2 %v1473_v11  ;;  %726 = vmatpush.bf16.xpose.msra.mxu3 %v1475_v31 }
 0x1d4   :  { %714 = vmatpush.bf16.xpose.msra.mxu2 %v1465_v5  ;;  %727 = vmatpush.bf16.xpose.msra.mxu3 %v1467_v36 }
 0x1dc   :  { %715 = vmatpush.bf16.xpose.msra.mxu2 %v1457_v23  ;;  %728 = vmatpush.bf16.xpose.msra.mxu3 %v1459_v14  ;;  %v754_v23 = vshrl.u32 %v753_v54, 7 }
 0x1de   :  { %v755_v61 = vcvt.s32.f32 %v754_v23 }
 0x1e0   :  { %v756_v15 = vadd.f32 1.0, %v755_v61  ;;  %v759_v50 = vmul.f32 -100.0, %v755_v61 }
 0x1e2   :  { %v757_v25 = vmul.f32 100.0, %v756_v15 }
 0x1e3   :  { %716 = vmatmul.bf16.vlgmr.msra.gmra.mxu2 %v704_v35  ;;  %729 = vmatmul.bf16.vlgmr.msra.gmra.mxu3 %v705_v57 }
 0x1fa   :  { %v699_v62 = vpop.permute.xlu2 %698 }
 0x266   :  { %v717_v53 = vpop.f32.mrf.mxu2  ;;  %v730_v11 = vpop.f32.mrf.mxu3 }
 0x267   :  { %v718_v2 = vadd.f32 %v717_v53, %v699_v62 }
 0x269   :  { %v731_v31 = vadd.f32 %v730_v11, %v718_v2 }
 0x26b   :  { %v832_v17 = vmul.f32 -1.442695, %v731_v31 }
 0x26d   :  { %892 = vpow2.f32 %v832_v17 }
 0x26e   :  { %v719_v5 = vpop.f32.mrf.mxu2  ;;  %v732_v36 = vpop.f32.mrf.mxu3 }
 0x273   :  { %v893_v29 = vpop.eup %892 }
 0x274   :  { %v737_v28 = vadd.f32 1.0, %v893_v29 }
 0x276   :  { %894 = vrcp.f32 %v737_v28  ;;  %v749_v0 = vand.u32 2147483648, %v737_v28  ;;  %v747_v58 = vand.u32 2147483647, %v737_v28  ;;  %vm743_vm2 = vweird.f32 %v737_v28 }
 0x278   :  { %v750_v47 = vor.u32 1.1754944e-38, %v749_v0  ;;  %vm748_vm4 = vcmp.eq.f32.partialorder %v747_v58, 8.507059e+37 }
 0x27c   :  { %v895_v14 = vpop.eup %894 }
 0x27d   :  { %v739_v4 = vmul.f32 %v895_v14, %v737_v28  ;;  %vm744_vm1 = vweird.f32 %v895_v14 }
 0x27e   :  { %vm745_vm3 = vmor %vm743_vm2, %vm744_vm1 }
 0x27f   :  { %v740_v8 = vsub.f32 1.0, %v739_v4 }
 0x281   :  { %v741_v3 = vmul.f32 %v895_v14, %v740_v8 }
 0x283   :  { %v742_v22 = vadd.f32 %v895_v14, %v741_v3 }
 0x285   :  { %v746_v51 = vsel %vm745_vm3, %v895_v14, %v742_v22 }
 0x286   :  { %v751_v63 = vsel %vm748_vm4, %v750_v47, %v746_v51 }
 0x287   :  { %v758_v30 = vmul.f32 %v757_v25, %v751_v63 }
 0x289   :  { %v760_v32 = vadd.f32 %v759_v50, %v758_v30 }
 0x28b   :  { %761 = vst [vmem:[%s1520_s5] sm:$0xff] %v760_v32 }
 0x28c   :  { %766 = vsyncpa [#allocation3], 1 }
 0x28d   :  { %767 = vsyncpa [#allocation5], 1 }

</bundles_post_ra>
